<compile_context>
chip_gen: v7x
topology: tpu7x:2x2x1
jax: 0.10.0
libtpu: 0.0.40
codegen_flags: <defaults>
</compile_context>

<pallas_src>
import functools

import jax
import jax.numpy as jnp
from jax import lax
from jax.experimental import pallas as pl
from jax.experimental.pallas import tpu as pltpu


HIDDEN = 128
_LANE = 128


def _round_up(n, m):
    return ((n + m - 1) // m) * m


def _default_bf16_activations():
    """bf16 tanh/VPU path on v6e/v7x; f32 activations on v5e (no bf16 VPU/EUP)."""
    try:
        kind = jax.devices()[0].device_kind.lower()
    except Exception:
        return True
    return "v5" not in kind


_BF16_ACT = _default_bf16_activations()


# ----------------------------- Pallas kernel ------------------------------ #
def net_kernel(x_ref, w1_ref, b1_ref, w2_ref, b2_ref, wh_ref, bh_ref,
               head_ref, *, sigma_start, sigma_end, bf16_act):
    # layer 1: tanh(x @ W1 + b1) -- bf16 MXU operands, f32 accumulate
    x = x_ref[...].astype(jnp.bfloat16)
    h1 = jnp.dot(x, w1_ref[...], preferred_element_type=jnp.float32) + b1_ref[...]
    if bf16_act:
        h1 = jnp.tanh(h1.astype(jnp.bfloat16))          # bf16 EUP (v6e/v7x)
    else:
        h1 = jnp.tanh(h1).astype(jnp.bfloat16)          # f32 EUP (v5e)

    # layer 2: tanh(h1 @ W2 + b2)
    h2 = jnp.dot(h1, w2_ref[...], preferred_element_type=jnp.float32) + b2_ref[...]
    if bf16_act:
        h2 = jnp.tanh(h2.astype(jnp.bfloat16))
    else:
        h2 = jnp.tanh(h2).astype(jnp.bfloat16)

    # fused heads: [critic | mu | sigma | zero-pad] in one lane-dense matmul
    head = jnp.dot(h2, wh_ref[...], preferred_element_type=jnp.float32) + bh_ref[...]

    # square the sigma columns; mask is a single (1, head_pad) lane row that
    # broadcasts over the batch sublanes (keeps the epilogue VPU work small
    # and the store a single dense 128-lane write).
    col = lax.broadcasted_iota(jnp.int32, (1, head.shape[1]), 1)
    is_sigma = (col >= sigma_start) & (col < sigma_end)
    head = jnp.where(is_sigma, head * head, head)

    head_ref[...] = head.astype(head_ref.dtype)


# ------------------------------- wrapper ----------------------------------- #
def prepare_params(params):
    """Run ONCE outside the hot path: fuse + zero-pad the three heads to 128
    lanes and cast the MXU weights to bf16."""
    (w1, b1, w2, b2, wc, bc, wmu, bmu, ws, bs) = params
    act_dim = int(wmu.shape[1])
    wh = jnp.concatenate([wc, wmu, ws], axis=1)          # (128, 1 + 2A)
    bh = jnp.concatenate([bc, bmu, bs], axis=1)          # (1,   1 + 2A)
    head_pad = max(_LANE, _round_up(wh.shape[1], _LANE))
    pad = head_pad - wh.shape[1]
    wh = jnp.pad(wh, ((0, 0), (0, pad)))
    bh = jnp.pad(bh, ((0, 0), (0, pad)))
    kernel_params = (w1.astype(jnp.bfloat16), b1,
                     w2.astype(jnp.bfloat16), b2,
                     wh.astype(jnp.bfloat16), bh)
    return kernel_params, act_dim


@functools.partial(jax.jit, static_argnames=("act_dim",))
def net_forward(x, kernel_params, act_dim):
    """Hot path. Returns (value, a_mu, a_sigma**2) in f32."""
    w1b, b1, w2b, b2, whb, bh = kernel_params
    head_pad = whb.shape[1]
    B, obs_dim = x.shape

    # Batch tiling: big batches tile in 1024-row blocks over a parallel grid;
    # small batches pad to a multiple of 16 sublanes (bf16 output packing).
    # Per-tile VMEM is < 1 MiB, so the same tiling is fine on v5e/v6e/v7x.
    tile_b = 1024 if B >= 1024 else _round_up(B, 16)
    b_pad = _round_up(B, tile_b)
    if b_pad != B:
        x = jnp.pad(x, ((0, b_pad - B), (0, 0)))
    grid = (b_pad // tile_b,)

    kernel = functools.partial(net_kernel,
                               sigma_start=1 + act_dim,
                               sigma_end=1 + 2 * act_dim,
                               bf16_act=_BF16_ACT)

    def const_spec(shape):
        # grid-invariant block: weights/biases loaded once, resident in VMEM
        return pl.BlockSpec(shape, lambda i: (0, 0))

    head = pl.pallas_call(
        kernel,
        out_shape=jax.ShapeDtypeStruct((b_pad, head_pad), jnp.bfloat16),
        grid_spec=pltpu.PrefetchScalarGridSpec(
            num_scalar_prefetch=0,
            grid=grid,
            in_specs=[
                pl.BlockSpec((tile_b, obs_dim), lambda i: (i, 0)),   # x
                const_spec((obs_dim, HIDDEN)),                       # w1 (bf16)
                const_spec((1, HIDDEN)),                             # b1 (f32)
                const_spec((HIDDEN, HIDDEN)),                        # w2 (bf16)
                const_spec((1, HIDDEN)),                             # b2 (f32)
                const_spec((HIDDEN, head_pad)),                      # w_head (bf16)
                const_spec((1, head_pad)),                           # b_head (f32)
            ],
            out_specs=pl.BlockSpec((tile_b, head_pad), lambda i: (i, 0)),
        ),
        compiler_params=pltpu.CompilerParams(
            dimension_semantics=("parallel",)),
    )(x, w1b, b1, w2b, b2, whb, bh)

    value = head[:B, 0:1].astype(jnp.float32)
    a_mu = head[:B, 1:1 + act_dim].astype(jnp.float32)
    a_sigma2 = head[:B, 1 + act_dim:1 + 2 * act_dim].astype(jnp.float32)
    return value, a_mu, a_sigma2


# ------------------------ deterministic initialization --------------------- #
def orthogonal_init(key, shape, gain=1.0):
    """Mimics torch.nn.init.orthogonal_ for a 2-D (out, in) weight."""
    rows, cols = shape
    flat_shape = (rows, cols) if rows >= cols else (cols, rows)
    a = jax.random.normal(key, flat_shape, dtype=jnp.float32)
    q, r = jnp.linalg.qr(a)
    d = jnp.sign(jnp.diag(r))
    d = jnp.where(d == 0, 1.0, d)       # avoid zeroing a column when R[i,i] == 0
    q = q * d[None, :]
    if rows < cols:
        q = q.T
    return gain * q[:rows, :cols]


def make_params(key, obs_dim, act_dim, hidden=HIDDEN):
    ks = jax.random.split(key, 5)
    # PyTorch Linear stores weight as (out, in); transpose to (in, out)
    # so the kernel computes x @ W.
    w1 = orthogonal_init(ks[0], (hidden, obs_dim)).T               # (obs, 128)
    w2 = orthogonal_init(ks[1], (hidden, hidden)).T                # (128, 128)
    wc = orthogonal_init(ks[2], (1, hidden)).T                     # (128, 1)
    wmu = orthogonal_init(ks[3], (act_dim, hidden), gain=0.01).T   # (128, A)
    ws = orthogonal_init(ks[4], (act_dim, hidden), gain=0.01).T    # (128, A)

    b1 = jnp.zeros((1, hidden), jnp.float32)
    b2 = jnp.zeros((1, hidden), jnp.float32)
    bc = jnp.zeros((1, 1), jnp.float32)
    bmu = jnp.zeros((1, act_dim), jnp.float32)
    bs = jnp.zeros((1, act_dim), jnp.float32)

    return (w1, b1, w2, b2, wc, bc, wmu, bmu, ws, bs)


# ------------------------------ reference ---------------------------------- #
def net_forward_ref(x, params):
    (w1, b1, w2, b2, wc, bc, wmu, bmu, ws, bs) = params
    h1 = jnp.tanh(x @ w1 + b1)
    h2 = jnp.tanh(h1 @ w2 + b2)
    value = h2 @ wc + bc
    mu = h2 @ wmu + bmu
    sigma = h2 @ ws + bs
    return value, mu, sigma ** 2


if __name__ == "__main__":
    key = jax.random.PRNGKey(0)
    k_x, k_p = jax.random.split(key)

    B, OBS, ACT = 8, 16, 8          # small MuJoCo-like shapes
    x = jax.random.normal(k_x, (B, OBS), dtype=jnp.float32)
    params = make_params(k_p, OBS, ACT)

    # One-time weight prep (hoisted out of the per-step forward).
    kernel_params, act_dim = prepare_params(params)
    kernel_params = jax.block_until_ready(kernel_params)

    value, a_mu, a_sigma2 = net_forward(x, kernel_params, act_dim)
    jax.block_until_ready((value, a_mu, a_sigma2))

    # sanity check against pure-JAX f32 reference (kernel uses bf16 MXU
    # operands and a bf16 output slab, so tolerances are relaxed accordingly)
    v_ref, mu_ref, s2_ref = net_forward_ref(x, params)
    assert value.shape == (B, 1) and a_mu.shape == (B, ACT) and a_sigma2.shape == (B, ACT)
    assert jnp.allclose(value, v_ref, atol=5e-2, rtol=5e-2)
    assert jnp.allclose(a_mu, mu_ref, atol=5e-2, rtol=5e-2)
    assert jnp.allclose(a_sigma2, s2_ref, atol=5e-2, rtol=5e-2)

    print("KERNEL_OK")
</pallas_src>

<mosaic_0001>
module attributes {stable_mosaic.version = 11 : i64} {
  func.func @net_kernel(%arg0: i32, %arg1: memref<16x16xf32, #tpu.memory_space<vmem>>, %arg2: memref<16x128xbf16, #tpu.memory_space<vmem>>, %arg3: memref<1x128xf32, #tpu.memory_space<vmem>>, %arg4: memref<128x128xbf16, #tpu.memory_space<vmem>>, %arg5: memref<1x128xf32, #tpu.memory_space<vmem>>, %arg6: memref<128x128xbf16, #tpu.memory_space<vmem>>, %arg7: memref<1x128xf32, #tpu.memory_space<vmem>>, %arg8: memref<16x128xbf16, #tpu.memory_space<vmem>>) attributes {dimension_semantics = [#tpu.dimension_semantics<parallel>], iteration_bounds = array<i64: 1>, scalar_prefetch = 0 : i64, scratch_operands = 0 : i64, tpu.core_type = #tpu.core_type<tc>, window_params = [{transform_indices = @transform_0, window_bounds = array<i64: 16, 16>}, {pipeline_mode = #tpu.pipeline_mode<synchronous>, transform_indices = @transform_1, window_bounds = array<i64: 16, 128>}, {pipeline_mode = #tpu.pipeline_mode<synchronous>, transform_indices = @transform_2, window_bounds = array<i64: 1, 128>}, {pipeline_mode = #tpu.pipeline_mode<synchronous>, transform_indices = @transform_3, window_bounds = array<i64: 128, 128>}, {pipeline_mode = #tpu.pipeline_mode<synchronous>, transform_indices = @transform_4, window_bounds = array<i64: 1, 128>}, {pipeline_mode = #tpu.pipeline_mode<synchronous>, transform_indices = @transform_5, window_bounds = array<i64: 128, 128>}, {pipeline_mode = #tpu.pipeline_mode<synchronous>, transform_indices = @transform_6, window_bounds = array<i64: 1, 128>}, {transform_indices = @transform_7, window_bounds = array<i64: 16, 128>}]} {
    %c0 = arith.constant 0 : index
    %c0_0 = arith.constant 0 : index
    %0 = vector.load %arg1[%c0, %c0_0] : memref<16x16xf32, #tpu.memory_space<vmem>>, vector<16x16xf32>
    %1 = arith.truncf %0 : vector<16x16xf32> to vector<16x16xbf16>
    %c0_1 = arith.constant 0 : index
    %c0_2 = arith.constant 0 : index
    %2 = vector.load %arg2[%c0_1, %c0_2] : memref<16x128xbf16, #tpu.memory_space<vmem>>, vector<16x128xbf16>
    %cst = arith.constant dense<0.000000e+00> : vector<16x128xf32>
    %3 = tpu.matmul %1, %2, %cst {dimension_numbers = #tpu.dot_dimension_numbers<[1], [0], [0], [1], [0, 0, 1, 1], [], []>} : vector<16x16xbf16>, vector<16x128xbf16>, vector<16x128xf32> -> vector<16x128xf32>
    %c0_3 = arith.constant 0 : index
    %c0_4 = arith.constant 0 : index
    %4 = vector.load %arg3[%c0_3, %c0_4] : memref<1x128xf32, #tpu.memory_space<vmem>>, vector<1x128xf32>
    %5 = vector.broadcast %4 : vector<1x128xf32> to vector<16x128xf32>
    %6 = arith.addf %3, %5 : vector<16x128xf32>
    %7 = arith.truncf %6 : vector<16x128xf32> to vector<16x128xbf16>
    %8 = math.tanh %7 : vector<16x128xbf16>
    %c0_5 = arith.constant 0 : index
    %c0_6 = arith.constant 0 : index
    %9 = vector.load %arg4[%c0_5, %c0_6] : memref<128x128xbf16, #tpu.memory_space<vmem>>, vector<128x128xbf16>
    %cst_7 = arith.constant dense<0.000000e+00> : vector<16x128xf32>
    %10 = tpu.matmul %8, %9, %cst_7 {dimension_numbers = #tpu.dot_dimension_numbers<[1], [0], [0], [1], [0, 0, 1, 1], [], []>} : vector<16x128xbf16>, vector<128x128xbf16>, vector<16x128xf32> -> vector<16x128xf32>
    %c0_8 = arith.constant 0 : index
    %c0_9 = arith.constant 0 : index
    %11 = vector.load %arg5[%c0_8, %c0_9] : memref<1x128xf32, #tpu.memory_space<vmem>>, vector<1x128xf32>
    %12 = vector.broadcast %11 : vector<1x128xf32> to vector<16x128xf32>
    %13 = arith.addf %10, %12 : vector<16x128xf32>
    %14 = arith.truncf %13 : vector<16x128xf32> to vector<16x128xbf16>
    %15 = math.tanh %14 : vector<16x128xbf16>
    %c0_10 = arith.constant 0 : index
    %c0_11 = arith.constant 0 : index
    %16 = vector.load %arg6[%c0_10, %c0_11] : memref<128x128xbf16, #tpu.memory_space<vmem>>, vector<128x128xbf16>
    %cst_12 = arith.constant dense<0.000000e+00> : vector<16x128xf32>
    %17 = tpu.matmul %15, %16, %cst_12 {dimension_numbers = #tpu.dot_dimension_numbers<[1], [0], [0], [1], [0, 0, 1, 1], [], []>} : vector<16x128xbf16>, vector<128x128xbf16>, vector<16x128xf32> -> vector<16x128xf32>
    %c0_13 = arith.constant 0 : index
    %c0_14 = arith.constant 0 : index
    %18 = vector.load %arg7[%c0_13, %c0_14] : memref<1x128xf32, #tpu.memory_space<vmem>>, vector<1x128xf32>
    %19 = vector.broadcast %18 : vector<1x128xf32> to vector<16x128xf32>
    %20 = arith.addf %17, %19 : vector<16x128xf32>
    %21 = tpu.iota {dimensions = array<i32: 1>} : vector<1x128xi32>
    %c9_i32 = arith.constant 9 : i32
    %22 = vector.broadcast %c9_i32 : i32 to vector<1x128xi32>
    %23 = arith.cmpi sge, %21, %22 : vector<1x128xi32>
    %c17_i32 = arith.constant 17 : i32
    %24 = vector.broadcast %c17_i32 : i32 to vector<1x128xi32>
    %25 = arith.cmpi slt, %21, %24 : vector<1x128xi32>
    %26 = arith.andi %23, %25 : vector<1x128xi1>
    %27 = arith.mulf %20, %20 : vector<16x128xf32>
    %28 = vector.shape_cast %26 : vector<1x128xi1> to vector<1x128xi1>
    %29 = vector.broadcast %28 : vector<1x128xi1> to vector<16x128xi1>
    %30 = arith.select %29, %27, %20 : vector<16x128xi1>, vector<16x128xf32>
    %31 = arith.truncf %30 : vector<16x128xf32> to vector<16x128xbf16>
    %c0_15 = arith.constant 0 : index
    %c0_16 = arith.constant 0 : index
    %32 = vector.load %arg8[%c0_15, %c0_16] : memref<16x128xbf16, #tpu.memory_space<vmem>>, vector<16x128xbf16>
    tpu.vector_store %arg8[%c0_15, %c0_16], %31 {strides = array<i32>} : memref<16x128xbf16, #tpu.memory_space<vmem>>, vector<16x128xbf16>,
    return
  }
  func.func @transform_0(%arg0: i32) -> (i32, i32) {
    %c0_i32 = arith.constant 0 : i32
    %c0_i32_0 = arith.constant 0 : i32
    return %arg0, %c0_i32 : i32, i32
  }
  func.func @transform_1(%arg0: i32) -> (i32, i32) {
    %c0_i32 = arith.constant 0 : i32
    %c0_i32_0 = arith.constant 0 : i32
    %c0_i32_1 = arith.constant 0 : i32
    return %c0_i32, %c0_i32_0 : i32, i32
  }
  func.func @transform_2(%arg0: i32) -> (i32, i32) {
    %c0_i32 = arith.constant 0 : i32
    %c0_i32_0 = arith.constant 0 : i32
    %c0_i32_1 = arith.constant 0 : i32
    return %c0_i32, %c0_i32_0 : i32, i32
  }
  func.func @transform_3(%arg0: i32) -> (i32, i32) {
    %c0_i32 = arith.constant 0 : i32
    %c0_i32_0 = arith.constant 0 : i32
    %c0_i32_1 = arith.constant 0 : i32
    return %c0_i32, %c0_i32_0 : i32, i32
  }
  func.func @transform_4(%arg0: i32) -> (i32, i32) {
    %c0_i32 = arith.constant 0 : i32
    %c0_i32_0 = arith.constant 0 : i32
    %c0_i32_1 = arith.constant 0 : i32
    return %c0_i32, %c0_i32_0 : i32, i32
  }
  func.func @transform_5(%arg0: i32) -> (i32, i32) {
    %c0_i32 = arith.constant 0 : i32
    %c0_i32_0 = arith.constant 0 : i32
    %c0_i32_1 = arith.constant 0 : i32
    return %c0_i32, %c0_i32_0 : i32, i32
  }
  func.func @transform_6(%arg0: i32) -> (i32, i32) {
    %c0_i32 = arith.constant 0 : i32
    %c0_i32_0 = arith.constant 0 : i32
    %c0_i32_1 = arith.constant 0 : i32
    return %c0_i32, %c0_i32_0 : i32, i32
  }
  func.func @transform_7(%arg0: i32) -> (i32, i32) {
    %c0_i32 = arith.constant 0 : i32
    %c0_i32_0 = arith.constant 0 : i32
    return %arg0, %c0_i32 : i32, i32
  }
}

</mosaic_0001>

<bundles_post_ra>
// kernel: net_forward.1
= control target key start
LH: loop header
LB: loop body
LE: loop exit
PB: predicated region body
PF: predicated region fallthrough
CT: control target
= control target key end

     0   :  { %12 = vsyncpa [#allocation3], 0  ;;  %s658_s0 = inlined_call_operand.vmem [shape: f32[16,16], index: 0, kind: input, shape index: {}]   ;;  %s659_s1 = inlined_call_operand.vmem [shape: bf16[16,128], index: 1, kind: input, shape index: {}]   ;;  %s660_s2 = inlined_call_operand.vmem [shape: f32[1,128], index: 2, kind: input, shape index: {}]   ;;  %s661_s3 = inlined_call_operand.hbm [shape: bf16[128,128], index: 3, kind: input, shape index: {}]   ;;  %s662_s4 = inlined_call_operand.vmem [shape: f32[1,128], index: 4, kind: input, shape index: {}]   ;;  %s663_s5 = inlined_call_operand.hbm [shape: bf16[128,128], index: 5, kind: input, shape index: {}]   ;;  %s664_s6 = inlined_call_operand.vmem [shape: f32[1,128], index: 6, kind: input, shape index: {}]   ;;  %s665_s7 = inlined_call_operand.vmem [shape: bf16[16,128], index: 7, kind: output, shape index: {}]  }
   0x1   :  { %13 = vsyncpa [#allocation5], 0  ;;  %s544_s24 = smov [#allocation2]   ;;  %s496_s28 = scalar_lea.hbm %s661_s3, 1024 }
   0x2   :  { %s25_s25 = sshll.u32 %s544_s24, 4  ;;  %p497_p0 = scmp.ne.s32.totalorder %s661_s3, %s496_s28  ;;  %s26_s25 = int_to_ptr.vmem [resolvable:$true] %s25_s25 }
   0x3   :  { %p500_p1 = scmp.lt.u32.totalorder %s496_s28, %s661_s3 }
   0x5   :  { %p502_p2 = pnand %p500_p1, %p497_p0 }
   0x7   :  { %505 = shalt.err (!%p502_p2)
}
   0x8   :  { %s506_s10 = scalar_lea.vmem %s26_s25, 1024  ;;  %p511_p4 = scmp.lt.s32.totalorder %s26_s25, %s26_s25 }
   0x9   :  { %p507_p3 = scmp.ne.s32.totalorder %s26_s25, %s506_s10  ;;  %p512_p5 = scmp.lt.s32.totalorder %s506_s10, %s506_s10 }
   0xb   :  { %p513_p6 = por %p512_p5, %p511_p4 }
   0xd   :  { %p514_p7 = pnand %p513_p6, %p507_p3 }
   0xf   :  { %517 = shalt.err (!%p514_p7)
}
  0x10   :  { %s545_s11 = smov 64   ;;  %s546_s12 = smov 4  }
  0x11   :  { %31 = dma.hbm_to_vmem [thread:$0]  %s661_s3, 1024, %s26_s25, [#allocation3], %s545_s11, %s545_s11, %s546_s12  }
  0x12   :  { %s547_s15 = smov [#allocation4]   ;;  %s518_s19 = scalar_lea.hbm %s663_s5, 1024 }
  0x13   :  { %s39_s16 = sshll.u32 %s547_s15, 4  ;;  %p519_p8 = scmp.ne.s32.totalorder %s663_s5, %s518_s19  ;;  %s40_s16 = int_to_ptr.vmem [resolvable:$true] %s39_s16 }
  0x14   :  { %p522_p9 = scmp.lt.u32.totalorder %s518_s19, %s663_s5 }
  0x16   :  { %p524_p10 = pnand %p522_p9, %p519_p8 }
  0x18   :  { %527 = shalt.err (!%p524_p10)
}
  0x19   :  { %s528_s24 = scalar_lea.vmem %s40_s16, 1024  ;;  %p533_p12 = scmp.lt.s32.totalorder %s40_s16, %s40_s16 }
  0x1a   :  { %p529_p11 = scmp.ne.s32.totalorder %s40_s16, %s528_s24  ;;  %p534_p13 = scmp.lt.s32.totalorder %s528_s24, %s528_s24 }
  0x1c   :  { %p535_p0 = por %p534_p13, %p533_p12 }
  0x1e   :  { %p536_p1 = pnand %p535_p0, %p529_p11 }
  0x20   :  { %539 = shalt.err (!%p536_p1)
}
  0x21   :  { %45 = dma.hbm_to_vmem [thread:$0]  %s663_s5, 1024, %s40_s16, [#allocation5], %s545_s11, %s545_s11, %s546_s12  }
  0x22   :  { %540 = dma.done.wait [#allocation3], 1024  }
  0x23   :  { %541 = vsyncadd [#allocation3], 4294966272 }
  0x24   :  { %542 = dma.done.wait [#allocation5], 1024  }
  0x25   :  { %543 = vsyncadd [#allocation5], 4294966272  ;;  %v548_v0 = vmov 0.0   ;;  %vm549_vm0 = vmmov 0   ;;  %v475_v1 = vld [vmem:[%s659_s1] sm:$0xff]   ;;  %v56_v3 = vld [vmem:[%s658_s0 + $0x8] sm:$0xff]  ;;  %v346_v39 = vlaneseq }
  0x26   :  { %423 = vmatprep.subr.bf16.mxu0 %v548_v0  ;;  %425 = vmatprep.mubr.msk.bf16.mxu0 %vm549_vm0, %v548_v0  ;;  %v55_v2 = vld [vmem:[%s658_s0] sm:$0xff]  ;;  %vm73_vm1 = vcmask 130048   ;;  %v477_v6 = vld [vmem:[#allocation2 + $0x8] sm:$0xff]   ;;  %v478_v7 = vld [vmem:[#allocation2 + $0x10] sm:$0xff]  }
  0x27   :  { %429 = vmatprep.subr.bf16.mxu1 %v548_v0  ;;  %445 = vmatprep.mubr.msk.bf16.mxu1 %vm549_vm0, %v548_v0  ;;  %v57_v4 = vpack.c.bf16 %v56_v3, %v55_v2  ;;  %v476_v5 = vld [vmem:[#allocation2] sm:$0xff]   ;;  %v479_v8 = vld [vmem:[#allocation2 + $0x18] sm:$0xff]   ;;  %v481_v10 = vld [vmem:[#allocation2 + $0x28] sm:$0xff]   ;;  %v347_v40 = vand.u32 127, %v346_v39 }
  0x28   :  { %424 = vmatpush3.bf16.msra.mxu0 %v475_v1  ;;  %430 = vmatpush3.bf16.msra.mxu1 %v476_v5  ;;  %v480_v9 = vld [vmem:[#allocation2 + $0x20] sm:$0xff]   ;;  %v482_v11 = vld [vmem:[#allocation2 + $0x30] sm:$0xff]   ;;  %v483_v12 = vld [vmem:[#allocation2 + $0x38] sm:$0xff]  }
  0x29   :  { %449 = vmatprep.subr.bf16.mxu0 %v548_v0  ;;  %431 = vmatprep.subr.bf16.mxu1 %v548_v0  ;;  %v484_v13 = vld [vmem:[#allocation4] sm:$0xff]   ;;  %v485_v14 = vld [vmem:[#allocation4 + $0x8] sm:$0xff]   ;;  %v486_v15 = vld [vmem:[#allocation4 + $0x10] sm:$0xff]   ;;  %vm348_vm2 = vcmp.ge.s32.totalorder %v347_v40, 9  ;;  %vm349_vm3 = vcmp.lt.s32.totalorder %v347_v40, 17 }
  0x2a   :  { %v373_v16 = vld [vmem:[%s660_s2] ss:$0 sm:$0xff]  ;;  %v487_v25 = vld [vmem:[#allocation4 + $0x18] sm:$0xff]   ;;  %v489_v27 = vld [vmem:[#allocation4 + $0x28] sm:$0xff]  }
  0x2b   :  { %426 = vmatmul.mubr.msk.bf16.vlgmr.msra.gmra.mrb[0].mxu0 %vm73_vm1, %v57_v4  ;;  %v488_v26 = vld [vmem:[#allocation4 + $0x20] sm:$0xff]   ;;  %v490_v28 = vld [vmem:[#allocation4 + $0x30] sm:$0xff]   ;;  %v491_v29 = vld [vmem:[#allocation4 + $0x38] sm:$0xff]  }
  0x2c   :  { %465 = vmatprep.mubr.msk.bf16.mxu0 %vm549_vm0, %v548_v0  ;;  %432 = vmatpush3.bf16.msra.mxu1 %v477_v6  ;;  %v376_v30 = vld [vmem:[%s662_s4] ss:$0 sm:$0xff]  ;;  %vm350_vm4 = vmand %vm348_vm2, %vm349_vm3 }
  0x2d   :  { %433 = vmatprep.subr.bf16.mxu1 %v548_v0  ;;  %450 = vmatpush3.bf16.msra.mxu0 %v484_v13  ;;  %v385_v41 = vld [vmem:[%s664_s6] ss:$0 sm:$0xff] }
  0x2e   :  { %451 = vmatprep.subr.bf16.mxu0 %v548_v0 }
  0x30   :  { %434 = vmatpush3.bf16.msra.mxu1 %v478_v7 }
  0x31   :  { %435 = vmatprep.subr.bf16.mxu1 %v548_v0  ;;  %452 = vmatpush3.bf16.msra.mxu0 %v485_v14 }
  0x32   :  { %453 = vmatprep.subr.bf16.mxu0 %v548_v0 }
  0x34   :  { %436 = vmatpush3.bf16.msra.mxu1 %v479_v8 }
  0x35   :  { %437 = vmatprep.subr.bf16.mxu1 %v548_v0  ;;  %454 = vmatpush3.bf16.msra.mxu0 %v486_v15 }
  0x36   :  { %455 = vmatprep.subr.bf16.mxu0 %v548_v0 }
  0x38   :  { %438 = vmatpush3.bf16.msra.mxu1 %v480_v9 }
  0x39   :  { %439 = vmatprep.subr.bf16.mxu1 %v548_v0  ;;  %456 = vmatpush3.bf16.msra.mxu0 %v487_v25 }
  0x3a   :  { %457 = vmatprep.subr.bf16.mxu0 %v548_v0 }
  0x3c   :  { %440 = vmatpush3.bf16.msra.mxu1 %v481_v10 }
  0x3d   :  { %441 = vmatprep.subr.bf16.mxu1 %v548_v0  ;;  %458 = vmatpush3.bf16.msra.mxu0 %v488_v26 }
  0x3e   :  { %459 = vmatprep.subr.bf16.mxu0 %v548_v0 }
  0x40   :  { %442 = vmatpush3.bf16.msra.mxu1 %v482_v11 }
  0x41   :  { %443 = vmatprep.subr.bf16.mxu1 %v548_v0  ;;  %460 = vmatpush3.bf16.msra.mxu0 %v489_v27 }
  0x42   :  { %461 = vmatprep.subr.bf16.mxu0 %v548_v0 }
  0x44   :  { %444 = vmatpush3.bf16.msra.mxu1 %v483_v12 }
  0x45   :  { %462 = vmatpush3.bf16.msra.mxu0 %v490_v28 }
  0x46   :  { %463 = vmatprep.subr.bf16.mxu0 %v548_v0 }
  0x49   :  { %464 = vmatpush3.bf16.msra.mxu0 %v491_v29 }
  0xfe   :  { %v111_v17 = vpop.f32.mrb[0].mxu0 }
  0xff   :  { %v427_v18 = vpop.f32.mrb[1].mxu0  ;;  %v112_v20 = vadd.f32 %v373_v16, %v111_v17 }
 0x100   :  { %v114_v19 = vpop.f32.mrb[2].mxu0 }
 0x101   :  { %v115_v21 = vadd.f32 %v373_v16, %v114_v19  ;;  %v428_v22 = vpop.f32.mrb[3].mxu0 }
 0x103   :  { %v118_v23 = vpack.c.bf16 %v115_v21, %v112_v20 }
 0x105   :  { %492 = vtanh.bf16 %v118_v23 }
 0x110   :  { %v493_v24 = vpop.eup %492 }
 0x111   :  { %446 = vmatmul.mubr.bf16.vlgmr.msra.gmra.mrb[0].mxu1 %v493_v24 }
 0x1e4   :  { %v225_v31 = vpop.f32.mrb[0].mxu1 }
 0x1e5   :  { %v447_v32 = vpop.f32.mrb[1].mxu1  ;;  %v226_v34 = vadd.f32 %v376_v30, %v225_v31 }
 0x1e6   :  { %v228_v33 = vpop.f32.mrb[2].mxu1 }
 0x1e7   :  { %v229_v35 = vadd.f32 %v376_v30, %v228_v33  ;;  %v448_v36 = vpop.f32.mrb[3].mxu1 }
 0x1e9   :  { %v232_v37 = vpack.c.bf16 %v229_v35, %v226_v34 }
 0x1eb   :  { %494 = vtanh.bf16 %v232_v37 }
 0x1f6   :  { %v495_v38 = vpop.eup %494 }
 0x1f7   :  { %466 = vmatmul.mubr.bf16.vlgmr.msra.gmra.mrb[4].mxu0 %v495_v38 }
 0x2ca   :  { %v339_v42 = vpop.f32.mrb[4].mxu0 }
 0x2cb   :  { %v340_v43 = vadd.f32 %v385_v41, %v339_v42  ;;  %v467_v44 = vpop.f32.mrb[5].mxu0 }
 0x2cc   :  { %v342_v45 = vpop.f32.mrb[6].mxu0 }
 0x2cd   :  { %v351_v46 = vmul.f32 %v340_v43, %v340_v43  ;;  %v343_v47 = vadd.f32 %v385_v41, %v342_v45  ;;  %v468_v48 = vpop.f32.mrb[7].mxu0 }
 0x2cf   :  { %v352_v49 = vmul.f32 %v343_v47, %v343_v47  ;;  %v355_v50 = vsel %vm350_vm4, %v351_v46, %v340_v43 }
 0x2d1   :  { %v356_v51 = vsel %vm350_vm4, %v352_v49, %v343_v47 }
 0x2d2   :  { %v401_v52 = vpack.c.bf16 %v356_v51, %v355_v50 }
 0x2d4   :  { %402 = vst [vmem:[%s665_s7] sm:$0xff] %v401_v52  }
 0x2d5   :  { %371 = vsyncpa [#allocation3], 1 }
 0x2d6   :  { %372 = vsyncpa [#allocation5], 1 }

</bundles_post_ra>
